<compile_context>
chip_gen: v6e
topology: v6e:2x2x1
jax: 0.10.0
libtpu: 0.0.40
codegen_flags: <defaults>
</compile_context>

<pallas_src>
import numpy as np

import jax
import jax.numpy as jnp
from jax.experimental import pallas as pl
from jax.experimental.pallas import tpu as pltpu


# ----------------------------------------------------------------------------
# Model configuration: 16 quantized conv layers (scaled-down yolov3-tiny heads)
# ----------------------------------------------------------------------------
LAYER_CFG = [  # (out_ch, in_ch, kh, kw)
    (8, 3, 3, 3), (16, 8, 3, 3), (16, 16, 3, 3), (32, 16, 3, 3),
    (32, 32, 3, 3), (32, 32, 3, 3), (32, 32, 3, 3), (16, 32, 1, 1),
    (32, 16, 3, 3), (24, 32, 1, 1), (8, 16, 1, 1), (32, 24, 3, 3),
    (24, 32, 1, 1), (16, 24, 1, 1), (32, 16, 3, 3), (24, 32, 1, 1),
]
NUM_LAYERS = len(LAYER_CFG)          # 16 -> sublane axis (multiple of 8)
C_PAD = 128                          # lane axis (max out_ch = 32, padded to 128)


# ----------------------------------------------------------------------------
# Fused Pallas kernel: gen_int_bias + gen_M_N for all 16 layers at once.
# Inputs/outputs are (16, 128): layer on sublanes, out-channel on lanes.
# ----------------------------------------------------------------------------
def _requant_kernel(s1_ref, s3_ref, s2_ref, bias_ref,
                    bias_out_ref, scale_out_ref, nreal_out_ref):
    s1 = s1_ref[...]        # (L, C_PAD) input-activation scale (row-broadcast)
    s3 = s3_ref[...]        # (L, C_PAD) output-activation scale (row-broadcast)
    s2 = s2_ref[...]        # (L, C_PAD) per-channel weight scale (pad lanes = 1)
    bias_f = bias_ref[...]  # (L, C_PAD) float bias              (pad lanes = 0)

    # --- gen_int_bias: round(bias / s1 / s2), round-half-to-even like Python's
    # round(); result viewed as uint32 (matches np.array(bias, dtype=np.uint32)).
    bias_i32 = jnp.round((bias_f / s1) / s2).astype(jnp.int32)
    bias_out_ref[...] = pltpu.bitcast(bias_i32, jnp.uint32)

    # --- gen_M_N via float32 exponent/mantissa bits (no serial doubling loop).
    # m = s1*s2/s3 > 0, so the sign bit is clear.  The reference doubles m until
    # it lies in [0.5, 1.0]; doubling only increments the exponent, so:
    #   k (number of doublings)      = 126 - biased_exponent      (if m < 0.5)
    #   m_norm bits                  = mantissa with exponent 126
    #   SCALE = uint32(m_norm * 2^32)= (0x800000 | mantissa) << 8  (exact)
    #   N_REAL = round(log2(SCALE/m)) - 33 = k - 1                 (exact)
    # NOTE: m > 1.0 makes the reference while-loop diverge and subnormal m is
    # unrealistic for quantization scales; neither occurs for real channels.
    m = (s1 * s2) / s3
    bits = pltpu.bitcast(m, jnp.int32)           # positive -> plain bit pattern
    exp = (bits >> 23) & 0xFF
    mant = bits & 0x007FFFFF

    in_range = jnp.logical_and(m >= 0.5, m <= 1.0)
    k = jnp.where(in_range, 0, 126 - exp)        # doublings performed

    scale_bits = (mant | 0x00800000) << 8        # == m_norm * 2^32 bit-exactly
    # m == 1.0 edge case: reference computes 1.0 * 2^32 then casts to uint32,
    # which wraps to 0 on the usual numpy/x86 path.
    scale_bits = jnp.where(m == 1.0, 0, scale_bits)
    scale_out_ref[...] = pltpu.bitcast(scale_bits, jnp.uint32)

    # k == 0 gives N_REAL = -1 -> 0xFFFFFFFF, matching numpy's uint32 wrap.
    nreal_out_ref[...] = pltpu.bitcast(k - 1, jnp.uint32)


def _build_requant_call():
    spec = pl.BlockSpec((NUM_LAYERS, C_PAD), lambda: (0, 0))
    return pl.pallas_call(
        _requant_kernel,
        out_shape=(
            jax.ShapeDtypeStruct((NUM_LAYERS, C_PAD), jnp.uint32),  # int bias
            jax.ShapeDtypeStruct((NUM_LAYERS, C_PAD), jnp.uint32),  # SCALE
            jax.ShapeDtypeStruct((NUM_LAYERS, C_PAD), jnp.uint32),  # N_REAL
        ),
        in_specs=[spec, spec, spec, spec],
        out_specs=(spec, spec, spec),
    )


@jax.jit
def _requant_all(s1_stack, s3_stack, s2_pad, bias_pad):
    """One fused kernel launch + per-layer slicing, all under a single jit."""
    bias_u32, scale_u32, nreal_u32 = _build_requant_call()(
        s1_stack, s3_stack, s2_pad, bias_pad)
    # __init__ quirk of the reference: self.bias0..bias15 ALL alias conv0's int
    # bias (layers 1..15 compute-and-discard).  Only row 0 of the bias output
    # is consumed; the other rows ride along for free in the same vregs.
    c0 = LAYER_CFG[0][0]
    bias0 = bias_u32[0, :c0]
    scales = tuple(scale_u32[i, :co] for i, (co, _, _, _) in enumerate(LAYER_CFG))
    nreals = tuple(nreal_u32[i, :co] for i, (co, _, _, _) in enumerate(LAYER_CFG))
    return bias0, scales, nreals


# ----------------------------------------------------------------------------
# Weight repack (add_weight_channel + get_weight): static layout transform of
# constant int8 data, only ever serialized -> host-side numpy (no device work).
# ----------------------------------------------------------------------------
def pack_weight(w_int8):
    """(K, Cin, kh, kw) int8 -> flat uint8 in FPGA order (r, s, K/8, C/8, 8, 8)."""
    K, C, R, S = w_int8.shape
    K8 = -(-K // 8) * 8
    C8 = -(-C // 8) * 8
    wp = np.zeros((K8, C8, R, S), np.int8)
    wp[:K, :C] = w_int8
    wp = wp.reshape(K8 // 8, 8, C8 // 8, 8, R, S)      # (kt, i8, ct, j8, r, s)
    wp = np.transpose(wp, (4, 5, 0, 2, 1, 3))          # (r, s, kt, ct, i8, j8)
    return np.ascontiguousarray(wp).reshape(-1).astype(np.uint8)  # wraps negatives


# ----------------------------------------------------------------------------
# Parameters: synthetic, deterministic stand-ins for ./q_paras, pre-padded and
# pre-stacked once into the lane-dense (16, 128) slabs the kernel consumes.
# ----------------------------------------------------------------------------
def make_params(key):
    s2_rows, s3_vals, bias_rows, weights = [], [], [], []
    s1_vals = []
    s1 = np.float32(0.02)                     # quant.scale (input activation)
    for (co, ci, kh, kw) in LAYER_CFG:
        key, kw_, ks2, ks3, kb = jax.random.split(key, 5)
        w_int8 = np.asarray(
            jax.random.randint(kw_, (co, ci, kh, kw), -127, 128, jnp.int32),
            dtype=np.int8)
        s2 = np.asarray(jax.random.uniform(ks2, (co,), jnp.float32, 0.002, 0.02))
        s3 = np.float32(jax.random.uniform(ks3, (), jnp.float32, 0.02, 0.06))
        bias_f = np.asarray(0.1 * jax.random.normal(kb, (co,), jnp.float32))
        s1_vals.append(s1)
        s2_rows.append(s2)
        s3_vals.append(s3)
        bias_rows.append(bias_f)
        weights.append(w_int8)
        s1 = s3                               # scale chaining: next s1 = this s3

    s1_stack = np.zeros((NUM_LAYERS, C_PAD), np.float32)
    s3_stack = np.zeros((NUM_LAYERS, C_PAD), np.float32)
    s2_pad = np.ones((NUM_LAYERS, C_PAD), np.float32)    # pad with 1 (div-safe)
    bias_pad = np.zeros((NUM_LAYERS, C_PAD), np.float32)
    for i, (co, _, _, _) in enumerate(LAYER_CFG):
        s1_stack[i, :] = s1_vals[i]
        s3_stack[i, :] = s3_vals[i]
        s2_pad[i, :co] = s2_rows[i]
        bias_pad[i, :co] = bias_rows[i]

    return dict(
        s1_stack=jnp.asarray(s1_stack),
        s3_stack=jnp.asarray(s3_stack),
        s2_pad=jnp.asarray(s2_pad),
        bias_pad=jnp.asarray(bias_pad),
        weights_int8=weights,                 # host numpy int8, per layer
    )


# ----------------------------------------------------------------------------
# Forward: reproduces QuantizableYolo_tiny.forward semantics.
# ----------------------------------------------------------------------------
def quantizable_yolo_tiny_forward(x, params):
    """`x` is accepted but unused (the reference passes the literal 1 to every
    Conv2d_Q).  Returns the per-layer streams the reference writes to
    'biasscaleshift.bin'."""
    del x  # matches the reference: the input tensor is never consumed

    bias0_u32, scales, nreals = _requant_all(
        params["s1_stack"], params["s3_stack"],
        params["s2_pad"], params["bias_pad"])

    outputs = []
    for li in range(NUM_LAYERS):
        outputs.append({
            "weight": pack_weight(params["weights_int8"][li]),  # uint8 bytes
            "bias": bias0_u32,     # conv0's int bias, reused for every layer
            "SCALE": scales[li],   # uint32 per out-channel
            "N_REAL": nreals[li],  # uint32 per out-channel
        })
    # TODO(synk): the reference serializes these streams to 'biasscaleshift.bin'
    # and returns None; file I/O has no Pallas equivalent, so the streams are
    # returned instead.
    return outputs


if __name__ == "__main__":
    key = jax.random.PRNGKey(0)
    key, kx = jax.random.split(key)
    # x matches the module's expected NCHW input; it is ignored by forward().
    x = jax.random.normal(kx, (2, 3, 16, 16), jnp.float32)

    params = make_params(key)
    outs = quantizable_yolo_tiny_forward(x, params)

    # Block on all device-resident results (weights are host numpy by design).
    jax.block_until_ready([(o["bias"], o["SCALE"], o["N_REAL"]) for o in outs])

    # Light sanity checks.
    assert len(outs) == NUM_LAYERS
    assert outs[0]["weight"].dtype == np.uint8
    assert outs[0]["SCALE"].dtype == jnp.uint32
    assert outs[0]["N_REAL"].dtype == jnp.uint32
    assert outs[0]["bias"].shape == (LAYER_CFG[0][0],)
    for li, (co, ci, kh, kw) in enumerate(LAYER_CFG):
        assert outs[li]["SCALE"].shape == (co,)
        k8 = -(-co // 8) * 8
        c8 = -(-ci // 8) * 8
        assert outs[li]["weight"].shape == (k8 * c8 * kh * kw,)
        # For these scale ranges M << 0.5, so N_REAL is a small positive shift.
        nr = np.asarray(outs[li]["N_REAL"])
        assert np.all(nr < 64), nr
    print("KERNEL_OK")
</pallas_src>

<mosaic_0001>
module attributes {stable_mosaic.version = 11 : i64} {
  func.func @_requant_kernel(%arg0: memref<16x128xf32, #tpu.memory_space<vmem>>, %arg1: memref<16x128xf32, #tpu.memory_space<vmem>>, %arg2: memref<16x128xf32, #tpu.memory_space<vmem>>, %arg3: memref<16x128xf32, #tpu.memory_space<vmem>>, %arg4: memref<16x128xi32, #tpu.memory_space<vmem>>, %arg5: memref<16x128xi32, #tpu.memory_space<vmem>>, %arg6: memref<16x128xi32, #tpu.memory_space<vmem>>) attributes {dimension_semantics = [], scalar_prefetch = 0 : i64, scratch_operands = 0 : i64, tpu.core_type = #tpu.core_type<tc>} {
    %c0 = arith.constant 0 : index
    %c0_0 = arith.constant 0 : index
    %0 = vector.load %arg0[%c0, %c0_0] : memref<16x128xf32, #tpu.memory_space<vmem>>, vector<16x128xf32>
    %c0_1 = arith.constant 0 : index
    %c0_2 = arith.constant 0 : index
    %1 = vector.load %arg1[%c0_1, %c0_2] : memref<16x128xf32, #tpu.memory_space<vmem>>, vector<16x128xf32>
    %c0_3 = arith.constant 0 : index
    %c0_4 = arith.constant 0 : index
    %2 = vector.load %arg2[%c0_3, %c0_4] : memref<16x128xf32, #tpu.memory_space<vmem>>, vector<16x128xf32>
    %c0_5 = arith.constant 0 : index
    %c0_6 = arith.constant 0 : index
    %3 = vector.load %arg3[%c0_5, %c0_6] : memref<16x128xf32, #tpu.memory_space<vmem>>, vector<16x128xf32>
    %4 = arith.divf %3, %0 : vector<16x128xf32>
    %5 = arith.divf %4, %2 : vector<16x128xf32>
    %6 = math.roundeven %5 : vector<16x128xf32>
    %7 = arith.fptosi %6 : vector<16x128xf32> to vector<16x128xi32>
    %8 = tpu.bitcast %7 : vector<16x128xi32> -> vector<16x128xi32>
    %c0_7 = arith.constant 0 : index
    %c0_8 = arith.constant 0 : index
    %9 = vector.load %arg4[%c0_7, %c0_8] : memref<16x128xi32, #tpu.memory_space<vmem>>, vector<16x128xi32>
    tpu.vector_store %arg4[%c0_7, %c0_8], %8 {strides = array<i32>} : memref<16x128xi32, #tpu.memory_space<vmem>>, vector<16x128xi32>,
    %10 = arith.mulf %0, %2 : vector<16x128xf32>
    %11 = arith.divf %10, %1 : vector<16x128xf32>
    %12 = tpu.bitcast %11 : vector<16x128xf32> -> vector<16x128xi32>
    %c23_i32 = arith.constant 23 : i32
    %13 = vector.broadcast %c23_i32 : i32 to vector<16x128xi32>
    %14 = arith.shrsi %12, %13 : vector<16x128xi32>
    %c255_i32 = arith.constant 255 : i32
    %15 = vector.broadcast %c255_i32 : i32 to vector<16x128xi32>
    %16 = arith.andi %14, %15 : vector<16x128xi32>
    %c8388607_i32 = arith.constant 8388607 : i32
    %17 = vector.broadcast %c8388607_i32 : i32 to vector<16x128xi32>
    %18 = arith.andi %12, %17 : vector<16x128xi32>
    %cst = arith.constant 5.000000e-01 : f32
    %19 = vector.broadcast %cst : f32 to vector<16x128xf32>
    %20 = arith.cmpf oge, %11, %19 : vector<16x128xf32>
    %cst_9 = arith.constant 1.000000e+00 : f32
    %21 = vector.broadcast %cst_9 : f32 to vector<16x128xf32>
    %22 = arith.cmpf ole, %11, %21 : vector<16x128xf32>
    %23 = arith.andi %20, %22 : vector<16x128xi1>
    %c126_i32 = arith.constant 126 : i32
    %24 = vector.broadcast %c126_i32 : i32 to vector<16x128xi32>
    %25 = arith.subi %24, %16 : vector<16x128xi32>
    %c0_i32 = arith.constant 0 : i32
    %26 = vector.broadcast %c0_i32 : i32 to vector<16x128xi32>
    %27 = arith.select %23, %26, %25 : vector<16x128xi1>, vector<16x128xi32>
    %c8388608_i32 = arith.constant 8388608 : i32
    %28 = vector.broadcast %c8388608_i32 : i32 to vector<16x128xi32>
    %29 = arith.ori %18, %28 : vector<16x128xi32>
    %c8_i32 = arith.constant 8 : i32
    %30 = vector.broadcast %c8_i32 : i32 to vector<16x128xi32>
    %31 = arith.shli %29, %30 : vector<16x128xi32>
    %cst_10 = arith.constant 1.000000e+00 : f32
    %32 = vector.broadcast %cst_10 : f32 to vector<16x128xf32>
    %33 = arith.cmpf oeq, %11, %32 : vector<16x128xf32>
    %c0_i32_11 = arith.constant 0 : i32
    %34 = vector.broadcast %c0_i32_11 : i32 to vector<16x128xi32>
    %35 = arith.select %33, %34, %31 : vector<16x128xi1>, vector<16x128xi32>
    %36 = tpu.bitcast %35 : vector<16x128xi32> -> vector<16x128xi32>
    %c0_12 = arith.constant 0 : index
    %c0_13 = arith.constant 0 : index
    %37 = vector.load %arg5[%c0_12, %c0_13] : memref<16x128xi32, #tpu.memory_space<vmem>>, vector<16x128xi32>
    tpu.vector_store %arg5[%c0_12, %c0_13], %36 {strides = array<i32>} : memref<16x128xi32, #tpu.memory_space<vmem>>, vector<16x128xi32>,
    %c1_i32 = arith.constant 1 : i32
    %38 = vector.broadcast %c1_i32 : i32 to vector<16x128xi32>
    %39 = arith.subi %27, %38 : vector<16x128xi32>
    %40 = tpu.bitcast %39 : vector<16x128xi32> -> vector<16x128xi32>
    %c0_14 = arith.constant 0 : index
    %c0_15 = arith.constant 0 : index
    %41 = vector.load %arg6[%c0_14, %c0_15] : memref<16x128xi32, #tpu.memory_space<vmem>>, vector<16x128xi32>
    tpu.vector_store %arg6[%c0_14, %c0_15], %40 {strides = array<i32>} : memref<16x128xi32, #tpu.memory_space<vmem>>, vector<16x128xi32>,
    return
  }
}

</mosaic_0001>

<bundles_post_ra>
// kernel: _requant_all.1
= control target key start
LH: loop header
LB: loop body
LE: loop exit
PB: predicated region body
PF: predicated region fallthrough
CT: control target
= control target key end

     0   :  { %12 = vsyncpa [#allocation3], 0  ;;  %s343_s0 = inlined_call_operand.hbm [shape: f32[16,128], index: 0, kind: input, shape index: {}]   ;;  %s344_s1 = inlined_call_operand.hbm [shape: f32[16,128], index: 1, kind: input, shape index: {}]   ;;  %s345_s2 = inlined_call_operand.hbm [shape: f32[16,128], index: 2, kind: input, shape index: {}]   ;;  %s346_s3 = inlined_call_operand.hbm [shape: f32[16,128], index: 3, kind: input, shape index: {}]   ;;  %s347_s4 = inlined_call_operand.vmem [shape: u32[16,128], index: 4, kind: output, shape index: {0}]   ;;  %s348_s5 = inlined_call_operand.vmem [shape: u32[16,128], index: 5, kind: output, shape index: {1}]   ;;  %s349_s6 = inlined_call_operand.vmem [shape: u32[16,128], index: 6, kind: output, shape index: {2}]  }
   0x1   :  { %13 = vsyncpa [#allocation5], 0 }
   0x2   :  { %14 = vsyncpa [#allocation8], 0  ;;  %s260_s21 = smov [#allocation4]   ;;  %s261_s23 = smov [#allocation2]  }
   0x3   :  { %s32_s22 = sshll.u32 %s260_s21, 4  ;;  %s20_s24 = sshll.u32 %s261_s23, 4  ;;  %s33_s22 = int_to_ptr.vmem [resolvable:$true] %s32_s22  ;;  %s21_s24 = int_to_ptr.vmem [resolvable:$true] %s20_s24 }
   0x4   :  { %s182_s25 = scalar_lea.vmem %s33_s22, 256  ;;  %p187_p1 = scmp.lt.s32.totalorder %s33_s22, %s33_s22 }
   0x5   :  { %p183_p0 = scmp.ne.s32.totalorder %s33_s22, %s182_s25  ;;  %p188_p2 = scmp.lt.s32.totalorder %s182_s25, %s182_s25 }
   0x7   :  { %p189_p3 = por %p188_p2, %p187_p1 }
   0x9   :  { %p190_p4 = pnand %p189_p3, %p183_p0 }
   0xb   :  { %193 = shalt.err (!%p190_p4)
}
   0xc   :  { %s262_s26 = smov 128   ;;  %s263_s27 = smov 8  }
   0xd   :  { %38 = dma.hbm_to_vmem [thread:$0]  %s344_s1, 256, %s33_s22, [#allocation5], %s262_s26, %s262_s26, %s263_s27  }
   0xe   :  { %s202_s30 = scalar_lea.vmem %s21_s24, 256  ;;  %p207_p6 = scmp.lt.s32.totalorder %s21_s24, %s21_s24 }
   0xf   :  { %p203_p5 = scmp.ne.s32.totalorder %s21_s24, %s202_s30  ;;  %p208_p7 = scmp.lt.s32.totalorder %s202_s30, %s202_s30 }
  0x11   :  { %p209_p8 = por %p208_p7, %p207_p6 }
  0x13   :  { %p210_p9 = pnand %p209_p8, %p203_p5 }
  0x15   :  { %213 = shalt.err (!%p210_p9)
}
  0x16   :  { %26 = dma.hbm_to_vmem [thread:$0]  %s343_s0, 256, %s21_s24, [#allocation3], %s262_s26, %s262_s26, %s263_s27  }
  0x17   :  { %s264_s9 = smov [#allocation6]   ;;  %s265_s11 = smov [#allocation7]  }
  0x18   :  { %s44_s10 = sshll.u32 %s264_s9, 4  ;;  %s56_s12 = sshll.u32 %s265_s11, 4  ;;  %s45_s10 = int_to_ptr.vmem [resolvable:$true] %s44_s10  ;;  %s57_s12 = int_to_ptr.vmem [resolvable:$true] %s56_s12 }
  0x19   :  { %s222_s1 = scalar_lea.vmem %s45_s10, 256  ;;  %p227_p11 = scmp.lt.s32.totalorder %s45_s10, %s45_s10 }
  0x1a   :  { %p223_p10 = scmp.ne.s32.totalorder %s45_s10, %s222_s1  ;;  %p228_p12 = scmp.lt.s32.totalorder %s222_s1, %s222_s1 }
  0x1c   :  { %p229_p13 = por %p228_p12, %p227_p11 }
  0x1e   :  { %p230_p0 = pnand %p229_p13, %p223_p10 }
  0x20   :  { %233 = shalt.err (!%p230_p0)
}
  0x21   :  { %50 = dma.hbm_to_vmem [thread:$0]  %s345_s2, 256, %s45_s10, [#allocation5], %s262_s26, %s262_s26, %s263_s27  }
  0x22   :  { %s242_s0 = scalar_lea.vmem %s57_s12, 256  ;;  %p247_p2 = scmp.lt.s32.totalorder %s57_s12, %s57_s12 }
  0x23   :  { %p243_p1 = scmp.ne.s32.totalorder %s57_s12, %s242_s0  ;;  %p248_p3 = scmp.lt.s32.totalorder %s242_s0, %s242_s0 }
  0x25   :  { %p249_p4 = por %p248_p3, %p247_p2 }
  0x27   :  { %p250_p5 = pnand %p249_p4, %p243_p1 }
  0x29   :  { %253 = shalt.err (!%p250_p5)
}
  0x2a   :  { %62 = dma.hbm_to_vmem [thread:$0]  %s346_s3, 256, %s57_s12, [#allocation8], %s262_s26, %s262_s26, %s263_s27  }
  0x2b   :  { %254 = dma.done.wait [#allocation3], 256  }
  0x2c   :  { %255 = vsyncadd [#allocation3], 4294967040 }
  0x2d   :  { %256 = dma.done.wait [#allocation5], 512  }
  0x2e   :  { %257 = vsyncadd [#allocation5], 4294966784 }
  0x2f   :  { %258 = dma.done.wait [#allocation8], 256  }
  0x30   :  { %259 = vsyncadd [#allocation8], 4294967040  ;;  %v75_v0 = vld [vmem:[#allocation2] sm:$0xff]  ;;  %v76_v2 = vld [vmem:[#allocation2 + $0x8] sm:$0xff] }
  0x31   :  { %v79_v1 = vld [vmem:[#allocation6] sm:$0xff]  ;;  %162 = vrcp.f32 %v75_v0  ;;  %v80_v3 = vld [vmem:[#allocation6 + $0x8] sm:$0xff]  ;;  %v77_v4 = vld [vmem:[#allocation4] sm:$0xff] }
  0x32   :  { %164 = vrcp.f32 %v79_v1  ;;  %v78_v5 = vld [vmem:[#allocation4 + $0x8] sm:$0xff]  ;;  %v81_v6 = vld [vmem:[#allocation7] sm:$0xff]  ;;  %v95_v11 = vmul.f32 %v79_v1, %v75_v0  ;;  %v96_v13 = vmul.f32 %v80_v3, %v76_v2 }
  0x33   :  { %166 = vrcp.f32 %v76_v2  ;;  %v82_v8 = vld [vmem:[#allocation7 + $0x8] sm:$0xff] }
  0x34   :  { %168 = vrcp.f32 %v80_v3 }
  0x35   :  { %170 = vrcp.f32 %v77_v4 }
  0x36   :  { %172 = vrcp.f32 %v78_v5 }
  0x3e   :  { %v163_v7 = vpop.eup %162 }
  0x3f   :  { %v165_v9 = vpop.eup %164  ;;  %v84_v10 = vmul.f32 %v163_v7, %v81_v6 }
  0x40   :  { %v167_v12 = vpop.eup %166 }
  0x41   :  { %v169_v14 = vpop.eup %168  ;;  %v88_v15 = vmul.f32 %v165_v9, %v84_v10  ;;  %v86_v16 = vmul.f32 %v167_v12, %v82_v8 }
  0x42   :  { %v171_v17 = vpop.eup %170 }
  0x43   :  { %v173_v18 = vpop.eup %172  ;;  %v152_v19 = vcvt.f32.s32 %v88_v15  ;;  %v90_v20 = vmul.f32 %v169_v14, %v86_v16  ;;  %v98_v21 = vmul.f32 %v171_v17, %v95_v11 }
  0x44   :  { %v100_v22 = vmul.f32 %v173_v18, %v96_v13 }
  0x45   :  { %93 = vst [vmem:[%s347_s4] sm:$0xff] %v152_v19  ;;  %v155_v23 = vcvt.f32.s32 %v90_v20  ;;  %v107_v24 = vand.u32 8388607, %v98_v21  ;;  %v103_v25 = vshra.s32 %v98_v21, 23  ;;  %vm109_vm0 = vcmp.ge.f32.partialorder %v98_v21, 0.5 }
  0x46   :  { %v108_v26 = vand.u32 8388607, %v100_v22  ;;  %vm111_vm1 = vcmp.le.f32.partialorder %v98_v21, 1.0  ;;  %v104_v29 = vshra.s32 %v100_v22, 23  ;;  %vm110_vm2 = vcmp.ge.f32.partialorder %v100_v22, 0.5 }
  0x47   :  { %94 = vst [vmem:[%s347_s4 + $0x8] sm:$0xff] %v155_v23  ;;  %v119_v27 = vor.u32 8388608, %v107_v24  ;;  %v105_v28 = vand.u32 255, %v103_v25  ;;  %vm123_vm3 = vcmp.eq.f32.partialorder %v98_v21, 1.0  ;;  %vm113_vm4 = vmand %vm109_vm0, %vm111_vm1  ;;  %vm112_vm5 = vcmp.le.f32.partialorder %v100_v22, 1.0 }
  0x48   :  { %v120_v30 = vor.u32 8388608, %v108_v26  ;;  %vm124_vm6 = vcmp.eq.f32.partialorder %v100_v22, 1.0  ;;  %v106_v33 = vand.u32 255, %v104_v29  ;;  %vm114_vm7 = vmand %vm110_vm2, %vm112_vm5 }
  0x49   :  { %v121_v31 = vshll.u32 %v119_v27, 8  ;;  %v115_v32 = vsub.s32 126, %v105_v28 }
  0x4a   :  { %v122_v34 = vshll.u32 %v120_v30, 8  ;;  %v116_v37 = vsub.s32 126, %v106_v33 }
  0x4b   :  { %v125_v35 = vsel %vm123_vm3, 0, %v121_v31  ;;  %v117_v36 = vsel %vm113_vm4, 0, %v115_v32 }
  0x4c   :  { %127 = vst [vmem:[%s348_s5] sm:$0xff] %v125_v35  ;;  %v126_v38 = vsel %vm124_vm6, 0, %v122_v34  ;;  %v148_v39 = vadd.s32 4294967295, %v117_v36  ;;  %v118_v40 = vsel %vm114_vm7, 0, %v116_v37 }
  0x4d   :  { %128 = vst [vmem:[%s348_s5 + $0x8] sm:$0xff] %v126_v38  ;;  %v149_v41 = vadd.s32 4294967295, %v118_v40 }
  0x4e   :  { %131 = vst [vmem:[%s349_s6] sm:$0xff] %v148_v39 }
  0x4f   :  { %132 = vst [vmem:[%s349_s6 + $0x8] sm:$0xff] %v149_v41 }
  0x50   :  { %145 = vsyncpa [#allocation3], 1 }
  0x51   :  { %146 = vsyncpa [#allocation5], 1 }
  0x52   :  { %147 = vsyncpa [#allocation8], 1 }

</bundles_post_ra>
